<compile_context>
chip_gen: v5e
topology: v5e:2x2
jax: 0.10.0
libtpu: 0.0.40
codegen_flags: <defaults>
</compile_context>

<pallas_src>
import functools

import jax
import jax.numpy as jnp
from jax.experimental import pallas as pl
from jax.experimental.pallas import tpu as pltpu


C_IN = 8
C_MID = 16
C_OUT = 8
NEG_SCALE = 16.0


def _fused_pointwise_kernel(x_ref, wt_ref, b_ref, o_ref):
    # x_ref : (1, 8, TW)  -- channels on sublanes, pixels on lanes (lane-dense)
    # wt_ref: (8, 8)      -- fused weight, transposed:  y = wt @ x
    # b_ref : (8, 1)      -- fused bias column, broadcast over lanes
    # o_ref : (1, 8, TW)
    x = x_ref[0]                                                  # (8, TW)
    y = jnp.dot(wt_ref[...], x, preferred_element_type=jnp.float32)
    y = y + b_ref[...]                                            # lane broadcast
    o_ref[0] = jnp.where(y > 0, y, y * NEG_SCALE)


def _pick_lane_tile(hw, max_tile=4096):
    """Lane tile: multiple of 128, <= max_tile, minimizing padding."""
    hw_pad = ((hw + 127) // 128) * 128
    if hw_pad <= max_tile:
        return hw_pad
    for t in range(max_tile, 127, -128):
        if hw_pad % t == 0:
            return t
    return max_tile


def fused_pointwise(x_ncm, w_t, b_col, *, max_tile=4096):
    """x_ncm: (N, 8, M) f32 -> (N, 8, M) f32 applying where(h>0,h,16h), h = w_t@x + b."""
    N, C, M = x_ncm.shape
    assert C == C_IN
    tw = _pick_lane_tile(M, max_tile)
    Mp = ((M + tw - 1) // tw) * tw
    if Mp != M:
        x_ncm = jnp.pad(x_ncm, ((0, 0), (0, 0), (0, Mp - M)))

    const = lambda n, m: (0, 0)
    y = pl.pallas_call(
        _fused_pointwise_kernel,
        out_shape=jax.ShapeDtypeStruct((N, C_OUT, Mp), jnp.float32),
        grid_spec=pltpu.PrefetchScalarGridSpec(
            num_scalar_prefetch=0,
            grid=(N, Mp // tw),
            in_specs=[
                pl.BlockSpec((1, C_IN, tw), lambda n, m: (n, 0, m)),
                pl.BlockSpec((C_OUT, C_IN), const),   # fused W^T, VMEM-resident
                pl.BlockSpec((C_OUT, 1), const),      # fused bias column
            ],
            out_specs=pl.BlockSpec((1, C_OUT, tw), lambda n, m: (n, 0, m)),
        ),
        compiler_params=pltpu.CompilerParams(
            dimension_semantics=("parallel", "parallel")),
    )(x_ncm, w_t, b_col)

    if Mp != M:
        y = y[:, :, :M]
    return y


def fuse_affine(params):
    """Collapse the three 1x1 ConvTranspose layers into one (8x8, 8) affine.

    ConvTranspose2d weight is stored (C_in, C_out, 1, 1) -> kept as (C_in, C_out)
    matrices here, so the channels-last chain is y = ((x@W1+b1)@W2+b2)@W3+b3."""
    w1, b1, w2, b2, w3, b3 = params
    wc = w1 @ w2 @ w3                        # (8, 8),  y = x @ wc  (channels-last)
    bc = b1 @ w2 @ w3 + b2 @ w3 + b3         # (1, 8)
    return wc.T, bc.T                        # (8,8) for y = wc^T @ x, (8,1) bias col


def model_forward(x_nchw, params, *, max_tile=4096):
    """x_nchw: (N, 8, H, W) f32 -> (N, 8, 2H, 2W) f32."""
    w_t, b_col = fuse_affine(params)
    N, C, H, W = x_nchw.shape
    assert C == C_IN

    # Free reshape (no transpose): channels-first is exactly what the kernel wants.
    x_flat = x_nchw.reshape(N, C, H * W)
    y_flat = fused_pointwise(x_flat, w_t, b_col, max_tile=max_tile)
    y = y_flat.reshape(N, C_OUT, H, W)

    # 2x nearest upsample: out[..., i, j] = y[..., i//2, j//2]; single copy pass.
    out = jnp.broadcast_to(y[:, :, :, None, :, None],
                           (N, C_OUT, H, 2, W, 2)).reshape(N, C_OUT, 2 * H, 2 * W)
    return out


def init_params(key):
    """Deterministic parameters matching the module's shapes (squeezed 1x1 kernels)."""
    k1, k2, k3, k4, k5, k6 = jax.random.split(key, 6)
    w1 = jax.random.normal(k1, (C_IN, C_MID), jnp.float32) * 0.1
    b1 = jax.random.normal(k2, (1, C_MID), jnp.float32) * 0.1
    w2 = jax.random.normal(k3, (C_MID, C_OUT), jnp.float32) * 0.1
    b2 = jax.random.normal(k4, (1, C_OUT), jnp.float32) * 0.1
    w3 = jax.random.normal(k5, (C_OUT, C_OUT), jnp.float32) * 0.1
    b3 = jax.random.normal(k6, (1, C_OUT), jnp.float32) * 0.1
    return (w1, b1, w2, b2, w3, b3)


if __name__ == "__main__":
    key = jax.random.PRNGKey(0)
    kx, kp = jax.random.split(key)

    # Small shapes consistent with the module: N=2, C=8, H=W=16
    x = jax.random.normal(kx, (2, C_IN, 16, 16), jnp.float32)
    params = init_params(kp)

    fwd = jax.jit(functools.partial(model_forward, max_tile=4096))
    out = jax.block_until_ready(fwd(x, params))

    # Reference: the ORIGINAL (unfused) three-matmul chain + leaky-where + 2x nearest.
    w1, b1, w2, b2, w3, b3 = params
    xcl = jnp.transpose(x, (0, 2, 3, 1))                    # (N,H,W,C)
    h = ((xcl @ w1 + b1) @ w2 + b2) @ w3 + b3
    h = jnp.where(h > 0, h, h * 16.0)
    ref = jnp.transpose(h, (0, 3, 1, 2))
    ref = jnp.repeat(jnp.repeat(ref, 2, axis=2), 2, axis=3)

    assert out.shape == (2, C_OUT, 32, 32), out.shape
    assert jnp.allclose(out, ref, atol=1e-5, rtol=1e-5), \
        float(jnp.max(jnp.abs(out - ref)))

    print("KERNEL_OK")
</pallas_src>

<mosaic_0001>
module attributes {stable_mosaic.version = 11 : i64} {
  func.func @_fused_pointwise_kernel(%arg0: i32, %arg1: i32, %arg2: memref<1x8x256xf32, #tpu.memory_space<vmem>>, %arg3: memref<8x8xf32, #tpu.memory_space<vmem>>, %arg4: memref<8x1xf32, #tpu.memory_space<vmem>>, %arg5: memref<1x8x256xf32, #tpu.memory_space<vmem>>) attributes {dimension_semantics = [#tpu.dimension_semantics<parallel>, #tpu.dimension_semantics<parallel>], iteration_bounds = array<i64: 2, 1>, scalar_prefetch = 0 : i64, scratch_operands = 0 : i64, tpu.core_type = #tpu.core_type<tc>, window_params = [{transform_indices = @transform_0, window_bounds = array<i64: 1, 8, 256>}, {pipeline_mode = #tpu.pipeline_mode<synchronous>, transform_indices = @transform_1, window_bounds = array<i64: 8, 8>}, {pipeline_mode = #tpu.pipeline_mode<synchronous>, transform_indices = @transform_2, window_bounds = array<i64: 8, 1>}, {transform_indices = @transform_3, window_bounds = array<i64: 1, 8, 256>}]} {
    %c0 = arith.constant 0 : index
    %c0_0 = arith.constant 0 : index
    %c0_1 = arith.constant 0 : index
    %0 = vector.load %arg2[%c0, %c0_0, %c0_1] : memref<1x8x256xf32, #tpu.memory_space<vmem>>, vector<1x8x256xf32>
    %1 = vector.shape_cast %0 : vector<1x8x256xf32> to vector<8x256xf32>
    %c0_2 = arith.constant 0 : index
    %c0_3 = arith.constant 0 : index
    %2 = vector.load %arg3[%c0_2, %c0_3] : memref<8x8xf32, #tpu.memory_space<vmem>>, vector<8x8xf32>
    %cst = arith.constant dense<0.000000e+00> : vector<8x256xf32>
    %3 = tpu.matmul %2, %1, %cst {dimension_numbers = #tpu.dot_dimension_numbers<[1], [0], [0], [1], [0, 0, 1, 1], [], []>} : vector<8x8xf32>, vector<8x256xf32>, vector<8x256xf32> -> vector<8x256xf32>
    %c0_4 = arith.constant 0 : index
    %c0_5 = arith.constant 0 : index
    %4 = vector.load %arg4[%c0_4, %c0_5] : memref<8x1xf32, #tpu.memory_space<vmem>>, vector<8x1xf32>
    %5 = vector.broadcast %4 : vector<8x1xf32> to vector<8x256xf32>
    %6 = arith.addf %3, %5 : vector<8x256xf32>
    %cst_6 = arith.constant 0.000000e+00 : f32
    %7 = vector.broadcast %cst_6 : f32 to vector<8x256xf32>
    %8 = arith.cmpf ogt, %6, %7 : vector<8x256xf32>
    %cst_7 = arith.constant 1.600000e+01 : f32
    %9 = vector.broadcast %cst_7 : f32 to vector<8x256xf32>
    %10 = arith.mulf %6, %9 : vector<8x256xf32>
    %11 = arith.select %8, %6, %10 : vector<8x256xi1>, vector<8x256xf32>
    %c0_8 = arith.constant 0 : index
    %c0_9 = arith.constant 0 : index
    %c0_10 = arith.constant 0 : index
    %12 = vector.load %arg5[%c0_8, %c0_9, %c0_10] : memref<1x8x256xf32, #tpu.memory_space<vmem>>, vector<1x8x256xf32>
    %13 = vector.shape_cast %12 : vector<1x8x256xf32> to vector<8x256xf32>
    %14 = vector.shape_cast %11 : vector<8x256xf32> to vector<1x8x256xf32>
    tpu.vector_store %arg5[%c0_8, %c0_9, %c0_10], %14 {strides = array<i32>} : memref<1x8x256xf32, #tpu.memory_space<vmem>>, vector<1x8x256xf32>,
    return
  }
  func.func @transform_0(%arg0: i32, %arg1: i32) -> (i32, i32, i32) {
    %c0_i32 = arith.constant 0 : i32
    %c0_i32_0 = arith.constant 0 : i32
    return %arg0, %c0_i32, %arg1 : i32, i32, i32
  }
  func.func @transform_1(%arg0: i32, %arg1: i32) -> (i32, i32) {
    %c0_i32 = arith.constant 0 : i32
    %c0_i32_0 = arith.constant 0 : i32
    %c0_i32_1 = arith.constant 0 : i32
    return %c0_i32, %c0_i32_0 : i32, i32
  }
  func.func @transform_2(%arg0: i32, %arg1: i32) -> (i32, i32) {
    %c0_i32 = arith.constant 0 : i32
    %c0_i32_0 = arith.constant 0 : i32
    %c0_i32_1 = arith.constant 0 : i32
    return %c0_i32, %c0_i32_0 : i32, i32
  }
  func.func @transform_3(%arg0: i32, %arg1: i32) -> (i32, i32, i32) {
    %c0_i32 = arith.constant 0 : i32
    %c0_i32_0 = arith.constant 0 : i32
    return %arg0, %c0_i32, %arg1 : i32, i32, i32
  }
}

</mosaic_0001>

<bundles_post_ra>
// kernel: model_forward.1
= control target key start
LH: loop header
LB: loop body
LE: loop exit
PB: predicated region body
PF: predicated region fallthrough
CT: control target
= control target key end

     0   :  { %s444_s12 = smov 0   ;;  %s446_s13 = smov 0   ;;  %s483_s0 = inlined_call_operand.vmem [shape: f32[2,8,256], index: 0, kind: input, shape index: {}]   ;;  %s484_s1 = inlined_call_operand.vmem [shape: f32[8,8], index: 1, kind: input, shape index: {}]   ;;  %s485_s2 = inlined_call_operand.vmem [shape: f32[8,1], index: 2, kind: input, shape index: {}]   ;;  %s486_s3 = inlined_call_operand.vmem [shape: f32[2,8,256], index: 3, kind: output, shape index: {}]  }
   0x1   :  { %s448_s14 = smov 0  }
   0x2 LB: > { %s25_s15 = sadd.s32 1, %s417_s13  ;;  %p362_p0 = scmp.ge.s32.totalorder %s421_s14, 1  ;;  %s421_s14 = sphi %s448_s14, %s13_s14   ;;  %s417_s13 = sphi %s446_s13, %s488_s13   ;;  %s413_s12 = sphi %s444_s12, %s487_s12  }
   0x3   : > { %p27_p1 = scmp.ge.s32.totalorder %s25_s15, 2  ;;  %p158_p2 = scmp.lt.s32.totalorder %s421_s14, 3 }
   0x5   : > { %s490_s15 = smov (%p27_p1, %s25_s15), 0  ;;  %p159_p3 = pnand %p362_p0, %p158_p2 }
   0x6   : > { %p191_p4 = scmp.lt.s32.totalorder (!%p159_p3), %s413_s12, 1 }
   0x7   : > { %162 = sbr.rel (%p159_p3) target bundleno = 150 (0x96), region = 32 }
   0xc   : > { %v213_v0 = vld [vmem:[%s485_s2] sm:$0xff]  ;;  %v423_v1 = vmov 0   ;;  %s492_s12 = smov (!%p191_p4, %s413_s12), 1  ;;  %vm219_vm0 = vcmask 64512  }
   0xd   : > { %398 = vset.pattern.permute.xlu0 %v423_v1  ;;  %s371_s18 = sshll.u32 %s492_s12, 4  ;;  %v212_v2 = vld [vmem:[%s484_s1] sm:$0xff] }
   0xe   : > { %216 = vperm.xlu0 %398, %v213_v0   ;;  %s198_s21 = scalar_lea.vmem %s483_s0, %s371_s18  ;;  %s208_s26 = scalar_lea.vmem %s486_s3, %s371_s18 }
   0xf   : > { %v210_v3 = vld [vmem:[%s198_s21] sm:$0xff]  ;;  %v211_v4 = vld [vmem:[%s198_s21 + $0x8] sm:$0xff] }
  0x10   : > { %238 = vmatpush.msra.mxu0 %v210_v3  ;;  %258 = vmatpush.msra.mxu1 %v211_v4 }
  0x11   : > { %367 = vmatmul.msk.f32.vlgmr.msra.gmra.mxu0 %vm219_vm0, %v212_v2  ;;  %368 = vmatmul.msk.f32.vlgmr.msra.gmra.mxu1 %vm219_vm0, %v212_v2 }
  0x80   : > { %v217_v5 = vpop.permute.xlu0 %216 }
  0x8e   : > { %v240_v6 = vpop.f32.mrf.mxu0  ;;  %v260_v7 = vpop.f32.mrf.mxu1 }
  0x8f   : > { %v241_v8 = vadd.f32 %v240_v6, %v217_v5  ;;  %v261_v9 = vadd.f32 %v260_v7, %v217_v5 }
  0x91   : > { %vm263_vm1 = vcmp.gt.f32.partialorder %v241_v8, 0.0  ;;  %v265_v10 = vmul.f32 16.0, %v241_v8  ;;  %vm264_vm2 = vcmp.gt.f32.partialorder %v261_v9, 0.0  ;;  %v266_v11 = vmul.f32 16.0, %v261_v9 }
  0x93   : > { %v267_v12 = vsel %vm263_vm1, %v241_v8, %v265_v10  ;;  %v268_v13 = vsel %vm264_vm2, %v261_v9, %v266_v11 }
  0x94   : > { %269 = vst [vmem:[%s208_s26] sm:$0xff] %v267_v12 }
  0x95   : > { %270 = vst [vmem:[%s208_s26 + $0x8] sm:$0xff] %v268_v13 }
  0x96 PF: > { %s13_s14 = sadd.s32 1, %s421_s14   ;;  %s487_s12 = smov %s417_s13 }
  0x97   : > { %p10_p5 = scmp.ge.s32.totalorder %s13_s14, 4   ;;  %s488_s13 = smov %s490_s15 }
  0x99   :  { %12 = sbr.rel (!%p10_p5) target bundleno = 2 (0x2), region = 62 }

</bundles_post_ra>
